<compile_context>
chip_gen: v6e
topology: v6e:2x2x1
jax: 0.10.0
libtpu: 0.0.40
codegen_flags: <defaults>
</compile_context>

<pallas_src>
import functools

import jax
import jax.numpy as jnp
from jax.experimental import pallas as pl
from jax.experimental.pallas import tpu as pltpu


_HALO = 128                       # halo block width (lanes); requires K-1 <= 128
_VMEM_LIMIT = 32 * 1024 * 1024    # explicit scoped-VMEM cap (>= defaults on all gens)


# ------------------------------ kernels -------------------------------------


def _conv_relu_tile(cur, nxt, w_ref, b_ref, K):
    """conv (K taps) + bias + ReLU for one lane tile; f32 accumulation on MXU.

    cur: (Cin, TL) bf16 tile of padded x; nxt: (Cin, 128) halo tile.
    w_ref: (K, Cout, Cin) bf16; b_ref: (Cout, 1) f32.
    """
    TL = cur.shape[-1]
    Cout = w_ref.shape[1]
    full = jnp.concatenate([cur, nxt], axis=-1)        # (Cin, TL + 128)
    acc = jnp.zeros((Cout, TL), jnp.float32)
    for k in range(K):                                 # static unroll, K is small
        acc += jnp.dot(w_ref[k], full[:, k:k + TL],
                       preferred_element_type=jnp.float32)
    return jnp.maximum(acc + b_ref[...], 0.0)          # (Cout, TL) f32


def _conv_relu_stats_kernel(x_ref, xh_ref, w_ref, b_ref, ssum_ref, ssq_ref,
                            *, K, TL, L_out, Lp, nLs):
    """Stats pass: conv+bias+ReLU per tile, accumulate per-channel sum/sumsq."""
    s = pl.program_id(1)
    j = pl.program_id(2)

    # Per-(batch, split) accumulators stay resident across the (arbitrary) j axis.
    @pl.when(j == 0)
    def _():
        ssum_ref[...] = jnp.zeros_like(ssum_ref)
        ssq_ref[...] = jnp.zeros_like(ssq_ref)

    acc = _conv_relu_tile(x_ref[0], xh_ref[0], w_ref, b_ref, K)

    if Lp == L_out:
        # No lane padding anywhere: plain reductions on every tile.
        ssum_ref[0, 0] += jnp.sum(acc, axis=1, keepdims=True)
        ssq_ref[0, 0] += jnp.sum(acc * acc, axis=1, keepdims=True)
    else:
        # Only the last *global* tile carries lane padding (cols >= L_out).
        is_last = jnp.logical_and(s == pl.num_programs(1) - 1, j == nLs - 1)

        @pl.when(is_last)
        def _():
            col = (Lp - TL) + jax.lax.broadcasted_iota(jnp.int32, (1, TL), 1)
            av = acc * (col < L_out).astype(jnp.float32)
            ssum_ref[0, 0] += jnp.sum(av, axis=1, keepdims=True)
            ssq_ref[0, 0] += jnp.sum(av * av, axis=1, keepdims=True)

        @pl.when(jnp.logical_not(is_last))
        def _():
            ssum_ref[0, 0] += jnp.sum(acc, axis=1, keepdims=True)
            ssq_ref[0, 0] += jnp.sum(acc * acc, axis=1, keepdims=True)


def _conv_relu_affine_kernel(x_ref, xh_ref, w_ref, b_ref, scale_ref, shift_ref,
                             o_ref, *, K):
    """Output pass: recompute conv+bias+ReLU, apply folded BN, store once."""
    acc = _conv_relu_tile(x_ref[0], xh_ref[0], w_ref, b_ref, K)
    o_ref[0] = (acc * scale_ref[...] + shift_ref[...]).astype(o_ref.dtype)


# ------------------------------ tiling --------------------------------------


def _vmem_step_bytes(Cin, Cout, K, TL):
    """Rough per-step VMEM footprint (double-buffered pipeline + temporaries)."""
    bx = 2  # bf16 operands
    b = 2 * (Cin * TL * bx) + 2 * (Cin * _HALO * bx)      # x tile + halo, 2 bufs
    b += 2 * (K * Cout * Cin * bx) + 8 * Cout * 4         # weights, per-chan vecs
    b += 2 * (Cout * TL * 4)                              # f32 output tile, 2 bufs
    b += Cin * (TL + _HALO) * 4 + 2 * Cout * TL * 4       # in-kernel temporaries
    return b


def _choose_tile(L_out, Cin, Cout, K, *, max_tile=1024, budget=16 * 1024 * 1024):
    lp128 = ((L_out + 127) // 128) * 128
    tl = min(max_tile, lp128)
    # Keep the per-step footprint well under the scoped-VMEM limit.
    # TODO(synk): for very large Cout (>=~1k) a Cout grid axis would bound the
    # f32 output tile instead of shrinking TL.
    while tl > 128 and _vmem_step_bytes(Cin, Cout, K, tl) > budget:
        tl -= 128
    lp = ((L_out + tl - 1) // tl) * tl
    return tl, lp, lp // tl


# ------------------------------ wrapper --------------------------------------


def ulevel_block_1d(x_ncl, weight, bias, gamma=None, beta=None, *,
                    eps=1e-5, bn=True, matmul_dtype=jnp.bfloat16):
    """Forward pass of ULevelBlock1D.

    x_ncl:  (N, C_in, L)      (PyTorch NCL layout)
    weight: (C_out, C_in, K)  (nn.Conv1d weight)
    bias:   (C_out,)
    gamma/beta: (C_out,)      (BatchNorm affine; training-mode batch stats)
    """
    N, Cin, L = x_ncl.shape
    Cout, _, K = weight.shape
    assert 1 <= K - 1 <= _HALO or K == 1, "kernel_size - 1 must be <= 128"
    pad = (K - 1) // 2
    L_out = L + 2 * pad - (K - 1)

    TL, Lp, nL = _choose_tile(L_out, Cin, Cout, K)
    Lx = Lp + _HALO                      # room for the halo block past the last tile
    assert Lx >= pad + L

    # ---- the only XLA glue: one cheap pad + cast of x (no im2col copy) ------
    xk = jnp.pad(x_ncl.astype(matmul_dtype),
                 ((0, 0), (0, 0), (pad, Lx - pad - L)))          # (N, Cin, Lx) bf16
    wk = jnp.transpose(weight, (2, 0, 1)).astype(matmul_dtype)   # (K, Cout, Cin)
    b2 = bias.reshape(Cout, 1).astype(jnp.float32)
    hb = TL // _HALO                     # halo block-index stride

    if bn:
        assert gamma is not None and beta is not None
        # Optional L-axis split so megacore has >= 2 parallel units when N is odd.
        NS = 2 if (N % 2 == 1 and nL >= 2 and nL % 2 == 0) else 1
        nLs = nL // NS

        kern_a = functools.partial(_conv_relu_stats_kernel,
                                   K=K, TL=TL, L_out=L_out, Lp=Lp, nLs=nLs)
        ssum, ssq = pl.pallas_call(
            kern_a,
            grid=(N, NS, nLs),
            in_specs=[
                pl.BlockSpec((1, Cin, TL), lambda n, s, j: (n, 0, s * nLs + j)),
                pl.BlockSpec((1, Cin, _HALO),
                             lambda n, s, j: (n, 0, (s * nLs + j + 1) * hb)),
                pl.BlockSpec((K, Cout, Cin), lambda n, s, j: (0, 0, 0)),
                pl.BlockSpec((Cout, 1), lambda n, s, j: (0, 0)),
            ],
            out_specs=[
                pl.BlockSpec((1, 1, Cout, 1), lambda n, s, j: (n, s, 0, 0)),
                pl.BlockSpec((1, 1, Cout, 1), lambda n, s, j: (n, s, 0, 0)),
            ],
            out_shape=(
                jax.ShapeDtypeStruct((N, NS, Cout, 1), jnp.float32),
                jax.ShapeDtypeStruct((N, NS, Cout, 1), jnp.float32),
            ),
            compiler_params=pltpu.CompilerParams(
                dimension_semantics=("parallel", "parallel", "arbitrary"),
                vmem_limit_bytes=_VMEM_LIMIT),
        )(xk, xk, wk, b2)

        # ---- tiny per-channel finalize: fold BN into scale / shift ----------
        count = jnp.float32(N * L_out)
        tot = jnp.sum(ssum[..., 0], axis=(0, 1))                 # (Cout,)
        tot2 = jnp.sum(ssq[..., 0], axis=(0, 1))                 # (Cout,)
        mean = tot / count
        var = jnp.maximum(tot2 / count - mean * mean, 0.0)
        scale_f = gamma.astype(jnp.float32) * jax.lax.rsqrt(var + eps)
        shift_f = beta.astype(jnp.float32) - mean * scale_f
        scale = scale_f.reshape(Cout, 1)
        shift = shift_f.reshape(Cout, 1)
        # TODO(synk): BatchNorm running_mean/running_var buffer updates (module
        # state used only at eval time) are not modeled here.
    else:
        scale = jnp.ones((Cout, 1), jnp.float32)
        shift = jnp.zeros((Cout, 1), jnp.float32)

    # ---- output pass: recompute conv+ReLU, apply folded BN, store once ------
    kern_b = functools.partial(_conv_relu_affine_kernel, K=K)
    out = pl.pallas_call(
        kern_b,
        grid=(N, nL),
        in_specs=[
            pl.BlockSpec((1, Cin, TL), lambda n, j: (n, 0, j)),
            pl.BlockSpec((1, Cin, _HALO), lambda n, j: (n, 0, (j + 1) * hb)),
            pl.BlockSpec((K, Cout, Cin), lambda n, j: (0, 0, 0)),
            pl.BlockSpec((Cout, 1), lambda n, j: (0, 0)),
            pl.BlockSpec((Cout, 1), lambda n, j: (0, 0)),
            pl.BlockSpec((Cout, 1), lambda n, j: (0, 0)),
        ],
        out_specs=pl.BlockSpec((1, Cout, TL), lambda n, j: (n, 0, j)),
        out_shape=jax.ShapeDtypeStruct((N, Cout, L_out), jnp.float32),
        compiler_params=pltpu.CompilerParams(
            dimension_semantics=("parallel", "parallel"),
            vmem_limit_bytes=_VMEM_LIMIT),
    )(xk, xk, wk, b2, scale, shift)

    return out                                       # (N, Cout, L_out), no slice


# ------------------------------ reference ------------------------------------


def _conv_relu_ref(x_ncl, weight, bias, matmul_dtype=jnp.bfloat16):
    K = weight.shape[-1]
    pad = (K - 1) // 2
    xq = x_ncl.astype(matmul_dtype).astype(jnp.float32)
    wq = weight.astype(matmul_dtype).astype(jnp.float32)
    out = jax.lax.conv_general_dilated(
        xq, wq, window_strides=(1,), padding=((pad, pad),),
        dimension_numbers=("NCH", "OIH", "NCH"))
    return jnp.maximum(out + bias[None, :, None], 0.0)


def _reference(x_ncl, weight, bias, gamma, beta, *, eps=1e-5,
               matmul_dtype=jnp.bfloat16):
    out = _conv_relu_ref(x_ncl, weight, bias, matmul_dtype)
    mean = jnp.mean(out, axis=(0, 2), keepdims=True)
    var = jnp.mean((out - mean) ** 2, axis=(0, 2), keepdims=True)
    return (out - mean) * jax.lax.rsqrt(var + eps) * gamma[None, :, None] \
        + beta[None, :, None]


if __name__ == "__main__":
    N, Cin, Cout, L, K = 2, 4, 8, 16, 3

    key = jax.random.PRNGKey(0)
    kx, kw, kb, kg, kbt = jax.random.split(key, 5)

    x = jax.random.normal(kx, (N, Cin, L), dtype=jnp.float32)
    weight = 0.1 * jax.random.normal(kw, (Cout, Cin, K), dtype=jnp.float32)
    bias = 0.1 * jax.random.normal(kb, (Cout,), dtype=jnp.float32)
    gamma = 1.0 + 0.1 * jax.random.normal(kg, (Cout,), dtype=jnp.float32)
    beta = 0.1 * jax.random.normal(kbt, (Cout,), dtype=jnp.float32)

    # Full block (conv -> ReLU -> BatchNorm, training-mode batch stats).
    out = ulevel_block_1d(x, weight, bias, gamma, beta)
    out = jax.block_until_ready(out)
    ref = _reference(x, weight, bias, gamma, beta)
    assert out.shape == (N, Cout, L), out.shape
    err = float(jnp.max(jnp.abs(out - ref)))
    assert jnp.allclose(out, ref, atol=2e-3, rtol=2e-3), f"bn mismatch: {err}"

    # bn=False path (conv -> ReLU only).
    out_nb = jax.block_until_ready(ulevel_block_1d(x, weight, bias, bn=False))
    ref_nb = _conv_relu_ref(x, weight, bias)
    err_nb = float(jnp.max(jnp.abs(out_nb - ref_nb)))
    assert jnp.allclose(out_nb, ref_nb, atol=2e-3, rtol=2e-3), \
        f"no-bn mismatch: {err_nb}"

    print("KERNEL_OK")
</pallas_src>

<mosaic_0001>
module attributes {stable_mosaic.version = 11 : i64} {
  func.func @_conv_relu_stats_kernel(%arg0: i32, %arg1: i32, %arg2: i32, %arg3: memref<1x4x128xbf16, #tpu.memory_space<vmem>>, %arg4: memref<1x4x128xbf16, #tpu.memory_space<vmem>>, %arg5: memref<3x8x4xbf16, #tpu.memory_space<vmem>>, %arg6: memref<8x1xf32, #tpu.memory_space<vmem>>, %arg7: memref<1x1x8x1xf32, #tpu.memory_space<vmem>>, %arg8: memref<1x1x8x1xf32, #tpu.memory_space<vmem>>) attributes {dimension_semantics = [#tpu.dimension_semantics<parallel>, #tpu.dimension_semantics<parallel>, #tpu.dimension_semantics<arbitrary>], iteration_bounds = array<i64: 2, 1, 1>, scalar_prefetch = 0 : i64, scratch_operands = 0 : i64, tpu.core_type = #tpu.core_type<tc>, window_params = [{transform_indices = @transform_0, window_bounds = array<i64: 1, 4, 128>}, {transform_indices = @transform_1, window_bounds = array<i64: 1, 4, 128>}, {pipeline_mode = #tpu.pipeline_mode<synchronous>, transform_indices = @transform_2, window_bounds = array<i64: 3, 8, 4>}, {pipeline_mode = #tpu.pipeline_mode<synchronous>, transform_indices = @transform_3, window_bounds = array<i64: 8, 1>}, {transform_indices = @transform_4, window_bounds = array<i64: 1, 1, 8, 1>}, {transform_indices = @transform_5, window_bounds = array<i64: 1, 1, 8, 1>}]} {
    %c0_i32 = arith.constant 0 : i32
    %0 = arith.cmpi eq, %arg2, %c0_i32 : i32
    %1 = arith.extui %0 : i1 to i32
    %c0_i32_0 = arith.constant 0 : i32
    %2 = arith.cmpi ne, %1, %c0_i32_0 : i32
    scf.if %2 {
      %cst_23 = arith.constant 0.000000e+00 : f32
      %37 = vector.broadcast %cst_23 : f32 to vector<1x1x8x1xf32>
      %c0_24 = arith.constant 0 : index
      %c0_25 = arith.constant 0 : index
      %c0_26 = arith.constant 0 : index
      %c0_27 = arith.constant 0 : index
      %38 = vector.load %arg7[%c0_24, %c0_25, %c0_26, %c0_27] : memref<1x1x8x1xf32, #tpu.memory_space<vmem>>, vector<1x1x8x1xf32>
      tpu.vector_store %arg7[%c0_24, %c0_25, %c0_26, %c0_27], %37 {strides = array<i32>} : memref<1x1x8x1xf32, #tpu.memory_space<vmem>>, vector<1x1x8x1xf32>,
      %cst_28 = arith.constant 0.000000e+00 : f32
      %39 = vector.broadcast %cst_28 : f32 to vector<1x1x8x1xf32>
      %c0_29 = arith.constant 0 : index
      %c0_30 = arith.constant 0 : index
      %c0_31 = arith.constant 0 : index
      %c0_32 = arith.constant 0 : index
      %40 = vector.load %arg8[%c0_29, %c0_30, %c0_31, %c0_32] : memref<1x1x8x1xf32, #tpu.memory_space<vmem>>, vector<1x1x8x1xf32>
      tpu.vector_store %arg8[%c0_29, %c0_30, %c0_31, %c0_32], %39 {strides = array<i32>} : memref<1x1x8x1xf32, #tpu.memory_space<vmem>>, vector<1x1x8x1xf32>,
    } else {
    }
    %c0 = arith.constant 0 : index
    %c0_1 = arith.constant 0 : index
    %c0_2 = arith.constant 0 : index
    %3 = vector.load %arg3[%c0, %c0_1, %c0_2] : memref<1x4x128xbf16, #tpu.memory_space<vmem>>, vector<1x4x128xbf16>
    %4 = vector.shape_cast %3 : vector<1x4x128xbf16> to vector<4x128xbf16>
    %c0_3 = arith.constant 0 : index
    %c0_4 = arith.constant 0 : index
    %c0_5 = arith.constant 0 : index
    %5 = vector.load %arg4[%c0_3, %c0_4, %c0_5] : memref<1x4x128xbf16, #tpu.memory_space<vmem>>, vector<1x4x128xbf16>
    %6 = vector.shape_cast %5 : vector<1x4x128xbf16> to vector<4x128xbf16>
    %7 = tpu.concatenate %4, %6 in 1 : vector<4x128xbf16>, vector<4x128xbf16> -> vector<4x256xbf16>
    %cst = arith.constant 0.000000e+00 : f32
    %8 = vector.broadcast %cst : f32 to vector<8x128xf32>
    %c0_6 = arith.constant 0 : index
    %c0_7 = arith.constant 0 : index
    %c0_8 = arith.constant 0 : index
    %9 = vector.load %arg5[%c0_6, %c0_7, %c0_8] : memref<3x8x4xbf16, #tpu.memory_space<vmem>>, vector<1x8x4xbf16>
    %10 = vector.shape_cast %9 : vector<1x8x4xbf16> to vector<8x4xbf16>
    %11 = vector.extract_strided_slice %7 {offsets = [0, 0], sizes = [4, 128], strides = [1, 1]} : vector<4x256xbf16> to vector<4x128xbf16>
    %cst_9 = arith.constant dense<0.000000e+00> : vector<8x128xf32>
    %12 = tpu.matmul %10, %11, %cst_9 {dimension_numbers = #tpu.dot_dimension_numbers<[1], [0], [0], [1], [0, 0, 1, 1], [], []>} : vector<8x4xbf16>, vector<4x128xbf16>, vector<8x128xf32> -> vector<8x128xf32>
    %13 = arith.addf %8, %12 : vector<8x128xf32>
    %c1 = arith.constant 1 : index
    %c0_10 = arith.constant 0 : index
    %c0_11 = arith.constant 0 : index
    %14 = vector.load %arg5[%c1, %c0_10, %c0_11] : memref<3x8x4xbf16, #tpu.memory_space<vmem>>, vector<1x8x4xbf16>
    %15 = vector.shape_cast %14 : vector<1x8x4xbf16> to vector<8x4xbf16>
    %16 = vector.extract_strided_slice %7 {offsets = [0, 1], sizes = [4, 128], strides = [1, 1]} : vector<4x256xbf16> to vector<4x128xbf16>
    %cst_12 = arith.constant dense<0.000000e+00> : vector<8x128xf32>
    %17 = tpu.matmul %15, %16, %cst_12 {dimension_numbers = #tpu.dot_dimension_numbers<[1], [0], [0], [1], [0, 0, 1, 1], [], []>} : vector<8x4xbf16>, vector<4x128xbf16>, vector<8x128xf32> -> vector<8x128xf32>
    %18 = arith.addf %13, %17 : vector<8x128xf32>
    %c2 = arith.constant 2 : index
    %c0_13 = arith.constant 0 : index
    %c0_14 = arith.constant 0 : index
    %19 = vector.load %arg5[%c2, %c0_13, %c0_14] : memref<3x8x4xbf16, #tpu.memory_space<vmem>>, vector<1x8x4xbf16>
    %20 = vector.shape_cast %19 : vector<1x8x4xbf16> to vector<8x4xbf16>
    %21 = vector.extract_strided_slice %7 {offsets = [0, 2], sizes = [4, 128], strides = [1, 1]} : vector<4x256xbf16> to vector<4x128xbf16>
    %cst_15 = arith.constant dense<0.000000e+00> : vector<8x128xf32>
    %22 = tpu.matmul %20, %21, %cst_15 {dimension_numbers = #tpu.dot_dimension_numbers<[1], [0], [0], [1], [0, 0, 1, 1], [], []>} : vector<8x4xbf16>, vector<4x128xbf16>, vector<8x128xf32> -> vector<8x128xf32>
    %23 = arith.addf %18, %22 : vector<8x128xf32>
    %c0_16 = arith.constant 0 : index
    %c0_17 = arith.constant 0 : index
    %24 = vector.load %arg6[%c0_16, %c0_17] : memref<8x1xf32, #tpu.memory_space<vmem>>, vector<8x1xf32>
    %25 = vector.broadcast %24 : vector<8x1xf32> to vector<8x128xf32>
    %26 = arith.addf %23, %25 : vector<8x128xf32>
    %cst_18 = arith.constant 0.000000e+00 : f32
    %27 = vector.broadcast %cst_18 : f32 to vector<8x128xf32>
    %28 = arith.maximumf %26, %27 : vector<8x128xf32>
    %c0_i32_19 = arith.constant 0 : i32
    %29 = arith.cmpi eq, %arg1, %c0_i32_19 : i32
    %c0_i32_20 = arith.constant 0 : i32
    %30 = arith.cmpi eq, %arg2, %c0_i32_20 : i32
    %31 = arith.andi %29, %30 : i1
    %32 = arith.extui %31 : i1 to i32
    %c0_i32_21 = arith.constant 0 : i32
    %33 = arith.cmpi ne, %32, %c0_i32_21 : i32
    scf.if %33 {
      %37 = tpu.iota {dimensions = array<i32: 1>} : vector<1x128xi32>
      %c0_i32_23 = arith.constant 0 : i32
      %38 = vector.broadcast %c0_i32_23 : i32 to vector<1x128xi32>
      %39 = arith.addi %38, %37 : vector<1x128xi32>
      %c16_i32 = arith.constant 16 : i32
      %40 = vector.broadcast %c16_i32 : i32 to vector<1x128xi32>
      %41 = arith.cmpi slt, %39, %40 : vector<1x128xi32>
      %42 = arith.extui %41 : vector<1x128xi1> to vector<1x128xi32>
      %43 = arith.sitofp %42 : vector<1x128xi32> to vector<1x128xf32>
      %44 = vector.broadcast %43 : vector<1x128xf32> to vector<8x128xf32>
      %45 = arith.mulf %28, %44 : vector<8x128xf32>
      %c0_24 = arith.constant 0 : index
      %c0_25 = arith.constant 0 : index
      %c0_26 = arith.constant 0 : index
      %c0_27 = arith.constant 0 : index
      %46 = vector.load %arg7[%c0_24, %c0_25, %c0_26, %c0_27] : memref<1x1x8x1xf32, #tpu.memory_space<vmem>>, vector<1x1x8x1xf32>
      %47 = vector.shape_cast %46 : vector<1x1x8x1xf32> to vector<8x1xf32>
      %cst_28 = arith.constant dense<0.000000e+00> : vector<8xf32>
      %48 = vector.multi_reduction <add>, %45, %cst_28 [1] : vector<8x128xf32> to vector<8xf32>
      %49 = vector.shape_cast %48 : vector<8xf32> to vector<8x1xf32>
      %50 = arith.addf %47, %49 : vector<8x1xf32>
      %c0_29 = arith.constant 0 : index
      %c0_30 = arith.constant 0 : index
      %c0_31 = arith.constant 0 : index
      %c0_32 = arith.constant 0 : index
      %51 = vector.load %arg7[%c0_29, %c0_30, %c0_31, %c0_32] : memref<1x1x8x1xf32, #tpu.memory_space<vmem>>, vector<1x1x8x1xf32>
      %52 = vector.shape_cast %51 : vector<1x1x8x1xf32> to vector<8x1xf32>
      %53 = vector.shape_cast %50 : vector<8x1xf32> to vector<1x1x8x1xf32>
      tpu.vector_store %arg7[%c0_29, %c0_30, %c0_31, %c0_32], %53 {strides = array<i32>} : memref<1x1x8x1xf32, #tpu.memory_space<vmem>>, vector<1x1x8x1xf32>,
      %c0_33 = arith.constant 0 : index
      %c0_34 = arith.constant 0 : index
      %c0_35 = arith.constant 0 : index
      %c0_36 = arith.constant 0 : index
      %54 = vector.load %arg8[%c0_33, %c0_34, %c0_35, %c0_36] : memref<1x1x8x1xf32, #tpu.memory_space<vmem>>, vector<1x1x8x1xf32>
      %55 = vector.shape_cast %54 : vector<1x1x8x1xf32> to vector<8x1xf32>
      %56 = arith.mulf %45, %45 : vector<8x128xf32>
      %cst_37 = arith.constant dense<0.000000e+00> : vector<8xf32>
      %57 = vector.multi_reduction <add>, %56, %cst_37 [1] : vector<8x128xf32> to vector<8xf32>
      %58 = vector.shape_cast %57 : vector<8xf32> to vector<8x1xf32>
      %59 = arith.addf %55, %58 : vector<8x1xf32>
      %c0_38 = arith.constant 0 : index
      %c0_39 = arith.constant 0 : index
      %c0_40 = arith.constant 0 : index
      %c0_41 = arith.constant 0 : index
      %60 = vector.load %arg8[%c0_38, %c0_39, %c0_40, %c0_41] : memref<1x1x8x1xf32, #tpu.memory_space<vmem>>, vector<1x1x8x1xf32>
      %61 = vector.shape_cast %60 : vector<1x1x8x1xf32> to vector<8x1xf32>
      %62 = vector.shape_cast %59 : vector<8x1xf32> to vector<1x1x8x1xf32>
      tpu.vector_store %arg8[%c0_38, %c0_39, %c0_40, %c0_41], %62 {strides = array<i32>} : memref<1x1x8x1xf32, #tpu.memory_space<vmem>>, vector<1x1x8x1xf32>,
    } else {
    }
    %true = arith.constant true
    %34 = arith.xori %31, %true : i1
    %35 = arith.extui %34 : i1 to i32
    %c0_i32_22 = arith.constant 0 : i32
    %36 = arith.cmpi ne, %35, %c0_i32_22 : i32
    scf.if %36 {
      %c0_23 = arith.constant 0 : index
      %c0_24 = arith.constant 0 : index
      %c0_25 = arith.constant 0 : index
      %c0_26 = arith.constant 0 : index
      %37 = vector.load %arg7[%c0_23, %c0_24, %c0_25, %c0_26] : memref<1x1x8x1xf32, #tpu.memory_space<vmem>>, vector<1x1x8x1xf32>
      %38 = vector.shape_cast %37 : vector<1x1x8x1xf32> to vector<8x1xf32>
      %cst_27 = arith.constant dense<0.000000e+00> : vector<8xf32>
      %39 = vector.multi_reduction <add>, %28, %cst_27 [1] : vector<8x128xf32> to vector<8xf32>
      %40 = vector.shape_cast %39 : vector<8xf32> to vector<8x1xf32>
      %41 = arith.addf %38, %40 : vector<8x1xf32>
      %c0_28 = arith.constant 0 : index
      %c0_29 = arith.constant 0 : index
      %c0_30 = arith.constant 0 : index
      %c0_31 = arith.constant 0 : index
      %42 = vector.load %arg7[%c0_28, %c0_29, %c0_30, %c0_31] : memref<1x1x8x1xf32, #tpu.memory_space<vmem>>, vector<1x1x8x1xf32>
      %43 = vector.shape_cast %42 : vector<1x1x8x1xf32> to vector<8x1xf32>
      %44 = vector.shape_cast %41 : vector<8x1xf32> to vector<1x1x8x1xf32>
      tpu.vector_store %arg7[%c0_28, %c0_29, %c0_30, %c0_31], %44 {strides = array<i32>} : memref<1x1x8x1xf32, #tpu.memory_space<vmem>>, vector<1x1x8x1xf32>,
      %c0_32 = arith.constant 0 : index
      %c0_33 = arith.constant 0 : index
      %c0_34 = arith.constant 0 : index
      %c0_35 = arith.constant 0 : index
      %45 = vector.load %arg8[%c0_32, %c0_33, %c0_34, %c0_35] : memref<1x1x8x1xf32, #tpu.memory_space<vmem>>, vector<1x1x8x1xf32>
      %46 = vector.shape_cast %45 : vector<1x1x8x1xf32> to vector<8x1xf32>
      %47 = arith.mulf %28, %28 : vector<8x128xf32>
      %cst_36 = arith.constant dense<0.000000e+00> : vector<8xf32>
      %48 = vector.multi_reduction <add>, %47, %cst_36 [1] : vector<8x128xf32> to vector<8xf32>
      %49 = vector.shape_cast %48 : vector<8xf32> to vector<8x1xf32>
      %50 = arith.addf %46, %49 : vector<8x1xf32>
      %c0_37 = arith.constant 0 : index
      %c0_38 = arith.constant 0 : index
      %c0_39 = arith.constant 0 : index
      %c0_40 = arith.constant 0 : index
      %51 = vector.load %arg8[%c0_37, %c0_38, %c0_39, %c0_40] : memref<1x1x8x1xf32, #tpu.memory_space<vmem>>, vector<1x1x8x1xf32>
      %52 = vector.shape_cast %51 : vector<1x1x8x1xf32> to vector<8x1xf32>
      %53 = vector.shape_cast %50 : vector<8x1xf32> to vector<1x1x8x1xf32>
      tpu.vector_store %arg8[%c0_37, %c0_38, %c0_39, %c0_40], %53 {strides = array<i32>} : memref<1x1x8x1xf32, #tpu.memory_space<vmem>>, vector<1x1x8x1xf32>,
    } else {
    }
    return
  }
  func.func @transform_0(%arg0: i32, %arg1: i32, %arg2: i32) -> (i32, i32, i32) {
    %c1_i32 = arith.constant 1 : i32
    %0 = arith.muli %arg1, %c1_i32 : i32
    %1 = arith.addi %0, %arg2 : i32
    %c0_i32 = arith.constant 0 : i32
    %c0_i32_0 = arith.constant 0 : i32
    return %arg0, %c0_i32, %1 : i32, i32, i32
  }
  func.func @transform_1(%arg0: i32, %arg1: i32, %arg2: i32) -> (i32, i32, i32) {
    %c1_i32 = arith.constant 1 : i32
    %0 = arith.muli %arg1, %c1_i32 : i32
    %1 = arith.addi %0, %arg2 : i32
    %c1_i32_0 = arith.constant 1 : i32
    %2 = arith.addi %1, %c1_i32_0 : i32
    %c1_i32_1 = arith.constant 1 : i32
    %3 = arith.muli %2, %c1_i32_1 : i32
    %c0_i32 = arith.constant 0 : i32
    %c0_i32_2 = arith.constant 0 : i32
    return %arg0, %c0_i32, %3 : i32, i32, i32
  }
  func.func @transform_2(%arg0: i32, %arg1: i32, %arg2: i32) -> (i32, i32, i32) {
    %c0_i32 = arith.constant 0 : i32
    %c0_i32_0 = arith.constant 0 : i32
    %c0_i32_1 = arith.constant 0 : i32
    %c0_i32_2 = arith.constant 0 : i32
    return %c0_i32, %c0_i32_0, %c0_i32_1 : i32, i32, i32
  }
  func.func @transform_3(%arg0: i32, %arg1: i32, %arg2: i32) -> (i32, i32) {
    %c0_i32 = arith.constant 0 : i32
    %c0_i32_0 = arith.constant 0 : i32
    %c0_i32_1 = arith.constant 0 : i32
    return %c0_i32, %c0_i32_0 : i32, i32
  }
  func.func @transform_4(%arg0: i32, %arg1: i32, %arg2: i32) -> (i32, i32, i32, i32) {
    %c0_i32 = arith.constant 0 : i32
    %c0_i32_0 = arith.constant 0 : i32
    %c0_i32_1 = arith.constant 0 : i32
    return %arg0, %arg1, %c0_i32, %c0_i32_0 : i32, i32, i32, i32
  }
  func.func @transform_5(%arg0: i32, %arg1: i32, %arg2: i32) -> (i32, i32, i32, i32) {
    %c0_i32 = arith.constant 0 : i32
    %c0_i32_0 = arith.constant 0 : i32
    %c0_i32_1 = arith.constant 0 : i32
    return %arg0, %arg1, %c0_i32, %c0_i32_0 : i32, i32, i32, i32
  }
}

</mosaic_0001>

<bundles_post_ra>
// kernel: tpu_custom_call.1
= control target key start
LH: loop header
LB: loop body
LE: loop exit
PB: predicated region body
PF: predicated region fallthrough
CT: control target
= control target key end

     0   :  { %s823_s18 = smov 0   ;;  %s825_s19 = smov 0   ;;  %s900_s0 = inlined_call_operand.vmem [shape: bf16[2,4,256], index: 0, kind: input, shape index: {}]   ;;  %s901_s1 = inlined_call_operand.vmem [shape: bf16[2,4,256], index: 1, kind: input, shape index: {}]   ;;  %s902_s2 = inlined_call_operand.vmem [shape: bf16[3,8,4], index: 2, kind: input, shape index: {}]   ;;  %s903_s3 = inlined_call_operand.vmem [shape: f32[8,1], index: 3, kind: input, shape index: {}]   ;;  %s904_s4 = inlined_call_operand.vmem [shape: f32[2,1,8,1], index: 4, kind: output, shape index: {0}]   ;;  %s905_s5 = inlined_call_operand.vmem [shape: f32[2,1,8,1], index: 5, kind: output, shape index: {1}]  }
   0x1   :  { %s827_s20 = smov 0  }
   0x2 LB: > { %s35_s21 = sadd.s32 1, %s782_s19  ;;  %p691_p0 = scmp.ge.s32.totalorder %s786_s20, 1  ;;  %s786_s20 = sphi %s827_s20, %s16_s20   ;;  %s782_s19 = sphi %s825_s19, %s907_s19   ;;  %s778_s18 = sphi %s823_s18, %s906_s18  }
   0x3   : > { %p37_p1 = scmp.ge.s32.totalorder %s35_s21, 2  ;;  %p245_p2 = scmp.lt.s32.totalorder %s786_s20, 3 }
   0x5   : > { %s909_s21 = smov (%p37_p1, %s35_s21), 0  ;;  %p246_p3 = pnand %p691_p0, %p245_p2 }
   0x6   : > { %p297_p4 = scmp.lt.s32.totalorder (!%p246_p3), %s778_s18, 1  ;;  %s790_s30 = smov (!%p246_p3), 126  }
   0x7   : > { %249 = sbr.rel (%p246_p3) target bundleno = 492 (0x1ec), region = 36  ;;  %s791_s6 = smov (!%p246_p3), 127  }
   0xc   : > { %v788_v0 = vmov 0.0   ;;  %s911_s18 = smov (!%p297_p4, %s778_s18), 1  ;;  %vm789_vm0 = vmmov 0   ;;  %vm357_vm1 = vcmask 1041408   ;;  %vm353_vm2 = vcmask 31744   ;;  %v502_v6 = vld [vmem:[%s903_s3] sm:$0xff] }
   0xd   : > { %716 = vmatprep.subr.bf16.mxu0 %v788_v0  ;;  %722 = vmatprep.subr.bf16.mxu1 %v788_v0  ;;  %s706_s22 = sshll.u32 %s911_s18, 2  ;;  %v342_v4 = vld [vmem:[%s902_s2] sm:$0xf]  ;;  %v792_v5 = vmov 0   ;;  %vm453_vm3 = vcmask 1031168   ;;  %vm351_vm4 = vcmask 1039360   ;;  %v515_v22 = vlaneseq }
   0xe   : > { %718 = vmatprep.mubr.msk.bf16.mxu0 %vm789_vm0, %v788_v0  ;;  %724 = vmatprep.mubr.msk.bf16.mxu1 %vm789_vm0, %v788_v0  ;;  %s304_s25 = scalar_lea.vmem %s900_s0, %s706_s22  ;;  %s708_s26 = sadd.s32 2, %s706_s22  ;;  %v698_v14 = vld [vmem:[%s902_s2 + $0x4] sm:$0xf]  ;;  %v701_v16 = vld [vmem:[%s902_s2 + $0x8] sm:$0xf]  ;;  %vm337_vm5 = vcmask 7168  }
   0xf   : > { %v340_v1 = vld [vmem:[%s304_s25] sm:$0x3]  ;;  %s315_s29 = scalar_lea.vmem %s901_s1, %s708_s26  ;;  %763 = vset.pattern.permute.xlu0 %v792_v5  ;;  %s696_s15 = sshll.u32 %s911_s18, 3  ;;  %v516_v25 = vand.u32 127, %v515_v22 }
  0x10   : > { %449 = vrot.lane.b32.xlu1 %v340_v1, %s790_s30  ;;  %347 = vrot.lane.b32.xlu0 %v340_v1, %s791_s6  ;;  %v405_v2 = vsel %vm357_vm1, %v340_v1, 0  ;;  %v341_v3 = vld [vmem:[%s315_s29] sm:$0x3]  ;;  %s324_s22 = scalar_lea.vmem %s904_s4, %s696_s15  ;;  %s331_s24 = scalar_lea.vmem %s905_s5, %s696_s15 }
  0x11   : > { %723 = vmatpush3.bf16.msra.mxu1 %v405_v2  ;;  %338 = vst.msk [vmem:[%s324_s22] sm:$0xff] %vm337_vm5, %v788_v0  ;;  %vm517_vm6 = vcmp.lt.s32.totalorder %v516_v25, 16  ;;  %339 = vst.msk [vmem:[%s331_s24] sm:$0xff] %vm337_vm5, %v788_v0 }
  0x12   : > { %v703_v34 = vsel %vm517_vm6, 1.0, %v788_v0 }
  0x14   : > { %451 = vrot.lane.b32.xlu1 %v341_v3, %s790_s30  ;;  %349 = vrot.lane.b32.xlu0 %v341_v3, %s791_s6 }
  0x15   : > { %725 = vmatmul.mubr.msk.bf16.vlgmr.msra.gmra.mxu1 %vm353_vm2, %v342_v4 }
  0x18   : > { %505 = vperm.xlu0 %763, %v502_v6   ;;  %v521_v39 = vld [vmem:[%s324_s22] sm:$0xff] }
  0x19   : > { %v527_v41 = vld [vmem:[%s331_s24] sm:$0xff] }
  0x82   : > { %v450_v7 = vpop.permute.xlu1 %449  ;;  %v348_v8 = vpop.permute.xlu0 %347 }
  0x86   : > { %v452_v9 = vpop.permute.xlu1 %451  ;;  %v350_v10 = vpop.permute.xlu0 %349 }
  0x87   : > { %v454_v11 = vsel %vm453_vm3, %v450_v7, %v452_v9  ;;  %v352_v12 = vsel %vm351_vm4, %v348_v8, %v350_v10 }
  0x88   : > { %v359_v13 = vsel %vm357_vm1, %v352_v12, 0  ;;  %v459_v15 = vsel %vm357_vm1, %v454_v11, 0 }
  0x89   : > { %717 = vmatpush3.bf16.msra.mxu0 %v359_v13 }
  0x8a   : > { %728 = vmatprep.subr.bf16.mxu0 %v788_v0 }
  0x8c   : > { %719 = vmatmul.mubr.msk.bf16.vlgmr.msra.gmra.mxu0 %vm353_vm2, %v698_v14 }
  0x8d   : > { %729 = vmatpush3.bf16.msra.mxu0 %v459_v15  ;;  %730 = vmatprep.mubr.msk.bf16.mxu0 %vm789_vm0, %v788_v0 }
  0x93   : > { %v506_v29 = vpop.permute.xlu0 %505 }
  0x94   : > { %731 = vmatmul.mubr.msk.bf16.vlgmr.msra.gmra.mxu0 %vm353_vm2, %v701_v16 }
  0xd5   : > { %v441_v17 = vpop.f32.mrf.mxu1 }
  0xd7   : > { %v726_v18 = vpop.f32.mrf.mxu1 }
  0xd9   : > { %v444_v19 = vpop.f32.mrf.mxu1 }
  0xdb   : > { %v727_v20 = vpop.f32.mrf.mxu1 }
 0x14c   : > { %v395_v21 = vpop.f32.mrf.mxu0 }
 0x14d   : > { %v442_v27 = vadd.f32 %v441_v17, %v395_v21 }
 0x14e   : > { %v720_v23 = vpop.f32.mrf.mxu0 }
 0x150   : > { %v398_v24 = vpop.f32.mrf.mxu0 }
 0x152   : > { %v721_v26 = vpop.f32.mrf.mxu0 }
 0x154   : > { %v495_v28 = vpop.f32.mrf.mxu0 }
 0x155   : > { %v501_v30 = vadd.f32 %v495_v28, %v442_v27 }
 0x156   : > { %v732_v31 = vpop.f32.mrf.mxu0 }
 0x157   : > { %v508_v32 = vadd.f32 %v506_v29, %v501_v30 }
 0x158   : > { %v498_v33 = vpop.f32.mrf.mxu0 }
 0x159   : > { %v509_v35 = vmax.f32 %v508_v32, 0.0 }
 0x15a   : > { %v733_v36 = vpop.f32.mrf.mxu0 }
 0x15b   : > { %v520_v37 = vmul.f32 %v703_v34, %v509_v35 }
 0x15d   : > { %522 = vadd.xlane.f32.xlu1 %v520_v37  ;;  %v528_v38 = vmul.f32 %v520_v37, %v520_v37 }
 0x15f   : > { %529 = vadd.xlane.f32.xlu0 %v528_v38 }
 0x1e6   : > { %v523_v40 = vpop.xlane.xlu1 %522 }
 0x1e7   : > { %v524_v42 = vadd.f32 %v523_v40, %v521_v39 }
 0x1e8   : > { %v530_v43 = vpop.xlane.xlu0 %529 }
 0x1e9   : > { %526 = vst.msk [vmem:[%s324_s22] sm:$0xff] %vm337_vm5, %v524_v42  ;;  %v531_v44 = vadd.f32 %v530_v43, %v527_v41 }
 0x1eb   : > { %532 = vst.msk [vmem:[%s331_s24] sm:$0xff] %vm337_vm5, %v531_v44 }
 0x1ec PF: > { %s16_s20 = sadd.s32 1, %s786_s20   ;;  %s906_s18 = smov %s782_s19 }
 0x1ed   : > { %p13_p5 = scmp.ge.s32.totalorder %s16_s20, 4   ;;  %s907_s19 = smov %s909_s21 }
 0x1ef   :  { %15 = sbr.rel (!%p13_p5) target bundleno = 2 (0x2), region = 95 }

</bundles_post_ra>
